<compile_context>
chip_gen: v6e
topology: v6e:2x2x1
jax: 0.10.0
libtpu: 0.0.40
codegen_flags: <defaults>
</compile_context>

<pallas_src>
import functools

import jax
import jax.numpy as jnp
from jax.experimental import pallas as pl
from jax.experimental.pallas import tpu as pltpu


HIDDEN = 30          # nn.Linear(input_size, 30)
_LANE = 128
_SUBLANE = 8


def _round_up(n, m):
    return (n + m - 1) // m * m


def _mlp_kernel(x_ref, w1_ref, b1_ref, w2_ref, b2_ref, o_ref, *, n_in):
    # x_ref : [IN_P,  B_BLK]   (batch on lanes)
    # w1_ref: [HID_P, IN_P]    b1_ref: [HID_P, 1]
    # w2_ref: [OUT_P, HID_P]   b2_ref: [OUT_P, 1]
    # o_ref : [OUT_P, B_BLK]
    x = x_ref[...]
    w1 = w1_ref[...]

    # fc1 on the VPU: K = n_in (5) is far below MXU systolic depth, so an
    # unrolled outer-product accumulate beats an MXU push/drain round trip.
    acc = w1[:, 0:1] * x[0:1, :]
    for k in range(1, n_in):
        acc = acc + w1[:, k:k + 1] * x[k:k + 1, :]
    h = jnp.maximum(acc + b1_ref[...], 0.0)          # relu(fc1(state))

    # fc2 on the MXU with f32 accumulation; bias broadcasts along lanes.
    q = jnp.dot(w2_ref[...], h, preferred_element_type=jnp.float32)
    o_ref[...] = (q + b2_ref[...]).astype(o_ref.dtype)


def pad_params(w1, b1, w2, b2):
    """PyTorch-layout params -> zero-padded, feature-major kernel params."""
    hid, in_sz = w1.shape
    nb_action = w2.shape[0]
    hid_p = _round_up(hid, _SUBLANE)
    in_p = _round_up(in_sz, _SUBLANE)
    out_p = _round_up(nb_action, _SUBLANE)
    # Padded entries MUST stay zero so they cannot leak through relu / fc2.
    w1p = jnp.zeros((hid_p, in_p), jnp.float32).at[:hid, :in_sz].set(w1)
    b1p = jnp.zeros((hid_p, 1), jnp.float32).at[:hid, 0].set(b1)
    w2p = jnp.zeros((out_p, hid_p), jnp.float32).at[:nb_action, :hid].set(w2)
    b2p = jnp.zeros((out_p, 1), jnp.float32).at[:nb_action, 0].set(b2)
    return w1p, b1p, w2p, b2p


def network_forward(state, w1p, b1p, w2p, b2p, nb_action, *, batch_block=512):
    """state: [B, input_size] f32 -> q_values: [B, nb_action] f32."""
    B, in_sz = state.shape
    hid_p, in_p = w1p.shape
    out_p = w2p.shape[0]

    # Lane-dense batch block (multiple of 128), capped so tiny batches do not
    # over-pad; sized well inside v7x's 64 MiB VMEM with double-buffering.
    b_blk = min(batch_block, _round_up(max(B, 1), _LANE))
    b_pad = _round_up(B, b_blk)

    # Feature-major layout: batch on the lane axis, features zero-padded.
    x_t = jnp.zeros((in_p, b_pad), jnp.float32).at[:in_sz, :B].set(state.T)

    kernel = functools.partial(_mlp_kernel, n_in=in_sz)

    out = pl.pallas_call(
        kernel,
        out_shape=jax.ShapeDtypeStruct((out_p, b_pad), jnp.float32),
        grid=(b_pad // b_blk,),
        in_specs=[
            pl.BlockSpec((in_p, b_blk), lambda i: (0, i)),
            pl.BlockSpec((hid_p, in_p), lambda i: (0, 0)),
            pl.BlockSpec((hid_p, 1), lambda i: (0, 0)),
            pl.BlockSpec((out_p, hid_p), lambda i: (0, 0)),
            pl.BlockSpec((out_p, 1), lambda i: (0, 0)),
        ],
        out_specs=pl.BlockSpec((out_p, b_blk), lambda i: (0, i)),
        compiler_params=pltpu.CompilerParams(
            dimension_semantics=("parallel",)),   # shard blocks over v7x's 2 TCs
    )(x_t, w1p, b1p, w2p, b2p)

    # Slice the logical result back out ([nb_action, B] -> [B, nb_action]).
    return out[:nb_action, :B].T


def init_params(key, input_size, nb_action, hidden=HIDDEN):
    """nn.Linear-style init, PyTorch layout: W [out, in], b [out]."""
    k1, k2, k3, k4 = jax.random.split(key, 4)
    lim1 = 1.0 / jnp.sqrt(jnp.float32(input_size))
    lim2 = 1.0 / jnp.sqrt(jnp.float32(hidden))
    w1 = jax.random.uniform(k1, (hidden, input_size), jnp.float32, -lim1, lim1)
    b1 = jax.random.uniform(k2, (hidden,), jnp.float32, -lim1, lim1)
    w2 = jax.random.uniform(k3, (nb_action, hidden), jnp.float32, -lim2, lim2)
    b2 = jax.random.uniform(k4, (nb_action,), jnp.float32, -lim2, lim2)
    return w1, b1, w2, b2


if __name__ == "__main__":
    key = jax.random.PRNGKey(0)
    k_param, k_state = jax.random.split(key)

    input_size = 5    # 3 sensor signals + 2 orientation values
    nb_action = 3
    batch = 256       # replay-buffer sized batch; lane-dense in the kernel

    w1, b1, w2, b2 = init_params(k_param, input_size, nb_action)
    w1p, b1p, w2p, b2p = pad_params(w1, b1, w2, b2)
    state = jax.random.normal(k_state, (batch, input_size), jnp.float32)

    q_values = network_forward(state, w1p, b1p, w2p, b2p, nb_action)
    q_values = jax.block_until_ready(q_values)

    # Reference (intended semantics of the PyTorch module) in plain JAX.
    ref = jnp.maximum(state @ w1.T + b1, 0.0) @ w2.T + b2
    assert q_values.shape == (batch, nb_action)
    assert jnp.allclose(q_values, ref, atol=1e-4, rtol=1e-4)

    # Also exercise a tiny single-step batch (padded up to one 128-lane block).
    q_small = jax.block_until_ready(
        network_forward(state[:2], w1p, b1p, w2p, b2p, nb_action))
    assert q_small.shape == (2, nb_action)
    assert jnp.allclose(q_small, ref[:2], atol=1e-4, rtol=1e-4)

    print("KERNEL_OK")
</pallas_src>

<mosaic_0001>
module attributes {stable_mosaic.version = 11 : i64} {
  func.func @_mlp_kernel(%arg0: i32, %arg1: memref<8x256xf32, #tpu.memory_space<vmem>>, %arg2: memref<32x8xf32, #tpu.memory_space<vmem>>, %arg3: memref<32x1xf32, #tpu.memory_space<vmem>>, %arg4: memref<8x32xf32, #tpu.memory_space<vmem>>, %arg5: memref<8x1xf32, #tpu.memory_space<vmem>>, %arg6: memref<8x256xf32, #tpu.memory_space<vmem>>) attributes {dimension_semantics = [#tpu.dimension_semantics<parallel>], iteration_bounds = array<i64: 1>, scalar_prefetch = 0 : i64, scratch_operands = 0 : i64, tpu.core_type = #tpu.core_type<tc>, window_params = [{transform_indices = @transform_0, window_bounds = array<i64: 8, 256>}, {pipeline_mode = #tpu.pipeline_mode<synchronous>, transform_indices = @transform_1, window_bounds = array<i64: 32, 8>}, {pipeline_mode = #tpu.pipeline_mode<synchronous>, transform_indices = @transform_2, window_bounds = array<i64: 32, 1>}, {pipeline_mode = #tpu.pipeline_mode<synchronous>, transform_indices = @transform_3, window_bounds = array<i64: 8, 32>}, {pipeline_mode = #tpu.pipeline_mode<synchronous>, transform_indices = @transform_4, window_bounds = array<i64: 8, 1>}, {transform_indices = @transform_5, window_bounds = array<i64: 8, 256>}]} {
    %c0 = arith.constant 0 : index
    %c0_0 = arith.constant 0 : index
    %0 = vector.load %arg1[%c0, %c0_0] : memref<8x256xf32, #tpu.memory_space<vmem>>, vector<8x256xf32>
    %c0_1 = arith.constant 0 : index
    %c0_2 = arith.constant 0 : index
    %1 = vector.load %arg2[%c0_1, %c0_2] : memref<32x8xf32, #tpu.memory_space<vmem>>, vector<32x8xf32>
    %2 = vector.extract_strided_slice %1 {offsets = [0, 0], sizes = [32, 1], strides = [1, 1]} : vector<32x8xf32> to vector<32x1xf32>
    %3 = vector.extract_strided_slice %0 {offsets = [0, 0], sizes = [1, 256], strides = [1, 1]} : vector<8x256xf32> to vector<1x256xf32>
    %4 = vector.broadcast %2 : vector<32x1xf32> to vector<32x256xf32>
    %5 = vector.broadcast %3 : vector<1x256xf32> to vector<32x256xf32>
    %6 = arith.mulf %4, %5 : vector<32x256xf32>
    %7 = vector.extract_strided_slice %1 {offsets = [0, 1], sizes = [32, 1], strides = [1, 1]} : vector<32x8xf32> to vector<32x1xf32>
    %8 = vector.extract_strided_slice %0 {offsets = [1, 0], sizes = [1, 256], strides = [1, 1]} : vector<8x256xf32> to vector<1x256xf32>
    %9 = vector.broadcast %7 : vector<32x1xf32> to vector<32x256xf32>
    %10 = vector.broadcast %8 : vector<1x256xf32> to vector<32x256xf32>
    %11 = arith.mulf %9, %10 : vector<32x256xf32>
    %12 = arith.addf %6, %11 : vector<32x256xf32>
    %13 = vector.extract_strided_slice %1 {offsets = [0, 2], sizes = [32, 1], strides = [1, 1]} : vector<32x8xf32> to vector<32x1xf32>
    %14 = vector.extract_strided_slice %0 {offsets = [2, 0], sizes = [1, 256], strides = [1, 1]} : vector<8x256xf32> to vector<1x256xf32>
    %15 = vector.broadcast %13 : vector<32x1xf32> to vector<32x256xf32>
    %16 = vector.broadcast %14 : vector<1x256xf32> to vector<32x256xf32>
    %17 = arith.mulf %15, %16 : vector<32x256xf32>
    %18 = arith.addf %12, %17 : vector<32x256xf32>
    %19 = vector.extract_strided_slice %1 {offsets = [0, 3], sizes = [32, 1], strides = [1, 1]} : vector<32x8xf32> to vector<32x1xf32>
    %20 = vector.extract_strided_slice %0 {offsets = [3, 0], sizes = [1, 256], strides = [1, 1]} : vector<8x256xf32> to vector<1x256xf32>
    %21 = vector.broadcast %19 : vector<32x1xf32> to vector<32x256xf32>
    %22 = vector.broadcast %20 : vector<1x256xf32> to vector<32x256xf32>
    %23 = arith.mulf %21, %22 : vector<32x256xf32>
    %24 = arith.addf %18, %23 : vector<32x256xf32>
    %25 = vector.extract_strided_slice %1 {offsets = [0, 4], sizes = [32, 1], strides = [1, 1]} : vector<32x8xf32> to vector<32x1xf32>
    %26 = vector.extract_strided_slice %0 {offsets = [4, 0], sizes = [1, 256], strides = [1, 1]} : vector<8x256xf32> to vector<1x256xf32>
    %27 = vector.broadcast %25 : vector<32x1xf32> to vector<32x256xf32>
    %28 = vector.broadcast %26 : vector<1x256xf32> to vector<32x256xf32>
    %29 = arith.mulf %27, %28 : vector<32x256xf32>
    %30 = arith.addf %24, %29 : vector<32x256xf32>
    %c0_3 = arith.constant 0 : index
    %c0_4 = arith.constant 0 : index
    %31 = vector.load %arg3[%c0_3, %c0_4] : memref<32x1xf32, #tpu.memory_space<vmem>>, vector<32x1xf32>
    %32 = vector.broadcast %31 : vector<32x1xf32> to vector<32x256xf32>
    %33 = arith.addf %30, %32 : vector<32x256xf32>
    %cst = arith.constant 0.000000e+00 : f32
    %34 = vector.broadcast %cst : f32 to vector<32x256xf32>
    %35 = arith.maximumf %33, %34 : vector<32x256xf32>
    %c0_5 = arith.constant 0 : index
    %c0_6 = arith.constant 0 : index
    %36 = vector.load %arg4[%c0_5, %c0_6] : memref<8x32xf32, #tpu.memory_space<vmem>>, vector<8x32xf32>
    %cst_7 = arith.constant dense<0.000000e+00> : vector<8x256xf32>
    %37 = tpu.matmul %36, %35, %cst_7 {dimension_numbers = #tpu.dot_dimension_numbers<[1], [0], [0], [1], [0, 0, 1, 1], [], []>} : vector<8x32xf32>, vector<32x256xf32>, vector<8x256xf32> -> vector<8x256xf32>
    %c0_8 = arith.constant 0 : index
    %c0_9 = arith.constant 0 : index
    %38 = vector.load %arg5[%c0_8, %c0_9] : memref<8x1xf32, #tpu.memory_space<vmem>>, vector<8x1xf32>
    %39 = vector.broadcast %38 : vector<8x1xf32> to vector<8x256xf32>
    %40 = arith.addf %37, %39 : vector<8x256xf32>
    %c0_10 = arith.constant 0 : index
    %c0_11 = arith.constant 0 : index
    %41 = vector.load %arg6[%c0_10, %c0_11] : memref<8x256xf32, #tpu.memory_space<vmem>>, vector<8x256xf32>
    tpu.vector_store %arg6[%c0_10, %c0_11], %40 {strides = array<i32>} : memref<8x256xf32, #tpu.memory_space<vmem>>, vector<8x256xf32>,
    return
  }
  func.func @transform_0(%arg0: i32) -> (i32, i32) {
    %c0_i32 = arith.constant 0 : i32
    %c0_i32_0 = arith.constant 0 : i32
    return %c0_i32, %arg0 : i32, i32
  }
  func.func @transform_1(%arg0: i32) -> (i32, i32) {
    %c0_i32 = arith.constant 0 : i32
    %c0_i32_0 = arith.constant 0 : i32
    %c0_i32_1 = arith.constant 0 : i32
    return %c0_i32, %c0_i32_0 : i32, i32
  }
  func.func @transform_2(%arg0: i32) -> (i32, i32) {
    %c0_i32 = arith.constant 0 : i32
    %c0_i32_0 = arith.constant 0 : i32
    %c0_i32_1 = arith.constant 0 : i32
    return %c0_i32, %c0_i32_0 : i32, i32
  }
  func.func @transform_3(%arg0: i32) -> (i32, i32) {
    %c0_i32 = arith.constant 0 : i32
    %c0_i32_0 = arith.constant 0 : i32
    %c0_i32_1 = arith.constant 0 : i32
    return %c0_i32, %c0_i32_0 : i32, i32
  }
  func.func @transform_4(%arg0: i32) -> (i32, i32) {
    %c0_i32 = arith.constant 0 : i32
    %c0_i32_0 = arith.constant 0 : i32
    %c0_i32_1 = arith.constant 0 : i32
    return %c0_i32, %c0_i32_0 : i32, i32
  }
  func.func @transform_5(%arg0: i32) -> (i32, i32) {
    %c0_i32 = arith.constant 0 : i32
    %c0_i32_0 = arith.constant 0 : i32
    return %c0_i32, %arg0 : i32, i32
  }
}

</mosaic_0001>

<bundles_post_ra>
// kernel: tpu_custom_call.1
= control target key start
LH: loop header
LB: loop body
LE: loop exit
PB: predicated region body
PF: predicated region fallthrough
CT: control target
= control target key end

     0   :  { %v409_v2 = vmov 1   ;;  %v410_v3 = vmov 0   ;;  %s545_s0 = inlined_call_operand.vmem [shape: f32[8,256], index: 0, kind: input, shape index: {}]   ;;  %s546_s1 = inlined_call_operand.vmem [shape: f32[32,8], index: 1, kind: input, shape index: {}]   ;;  %s547_s2 = inlined_call_operand.vmem [shape: f32[32,1], index: 2, kind: input, shape index: {}]   ;;  %s548_s3 = inlined_call_operand.vmem [shape: f32[8,32], index: 3, kind: input, shape index: {}]   ;;  %s549_s4 = inlined_call_operand.vmem [shape: f32[8,1], index: 4, kind: input, shape index: {}]   ;;  %s550_s5 = inlined_call_operand.hbm [shape: f32[8,256], index: 5, kind: output, shape index: {}]  }
   0x1   :  { %v26_v0 = vld [vmem:[%s546_s1 + $0x18] sm:$0xff]  ;;  %v25_v1 = vld [vmem:[%s546_s1 + $0x10] sm:$0xff]  ;;  %369 = vset.pattern.permute.xlu0 %v409_v2  ;;  %371 = vset.pattern.permute.xlu1 %v410_v3 }
   0x2   :  { %76 = vperm.xlu0 %369, %v26_v0   ;;  %39 = vperm.xlu1 %371, %v25_v1  }
   0x3   :  { %10 = vsyncpa [#allocation3], 0  ;;  %v24_v4 = vld [vmem:[%s546_s1 + $0x8] sm:$0xff]  ;;  %v411_v5 = vmov 2   ;;  %v412_v6 = vmov 3   ;;  %v23_v7 = vld [vmem:[%s546_s1] sm:$0xff]  ;;  %v47_v21 = vlaneseq }
   0x4   :  { %v413_v8 = vmov 4   ;;  %v226_v9 = vld [vmem:[%s547_s2 + $0x18] sm:$0xff]  ;;  %v224_v10 = vld [vmem:[%s547_s2 + $0x8] sm:$0xff]  ;;  %v264_v11 = vld [vmem:[%s549_s4] sm:$0xff]  ;;  %v414_v14 = vmov 0.0   ;;  %vm270_vm0 = vcmask 261120  }
   0x5   :  { %v225_v12 = vld [vmem:[%s547_s2 + $0x10] sm:$0xff]  ;;  %v223_v13 = vld [vmem:[%s547_s2] sm:$0xff]  ;;  %338 = vmatprep.mubr.f32.mxu0 %v414_v14  ;;  %v48_v23 = vshrl.u32 %v47_v21, 7  ;;  %v22_v30 = vld [vmem:[%s545_s0 + $0x8] sm:$0xff]  ;;  %s415_s13 = smov [#allocation2]  }
   0x6   :  { %370 = vset.pattern.permute.xlu0 %v410_v3  ;;  %372 = vset.pattern.permute.xlu1 %v409_v2  ;;  %v21_v27 = vld [vmem:[%s545_s0] sm:$0xff]  ;;  %s353_s14 = sshll.u32 %s415_s13, 4  ;;  %s354_s14 = int_to_ptr.vmem [resolvable:$true] %s353_s14 }
   0x7   :  { %44 = vperm.xlu0 %370, %v26_v0   ;;  %72 = vperm.xlu1 %372, %v25_v1   ;;  %v49_v26 = vsub.s32 0, %v48_v23  ;;  %v81_v28 = vsub.s32 1, %v48_v23  ;;  %v121_v31 = vsub.s32 2, %v48_v23  ;;  %v161_v37 = vsub.s32 3, %v48_v23  ;;  %s387_s15 = scalar_lea.vmem %s354_s14, 256  ;;  %p392_p1 = scmp.lt.s32.totalorder %s354_s14, %s354_s14 }
   0x8   :  { %v201_v48 = vsub.s32 4, %v48_v23  ;;  %p388_p0 = scmp.ne.s32.totalorder %s354_s14, %s387_s15  ;;  %p393_p2 = scmp.lt.s32.totalorder %s387_s15, %s387_s15 }
   0x9   :  { %v485_v32 = vrot.slane %v21_v27, %v49_v26  ;;  %v487_v34 = vrot.slane %v22_v30, %v49_v26  ;;  %v82_v35 = vrot.slane %v21_v27, %v81_v28  ;;  %v86_v36 = vrot.slane %v22_v30, %v81_v28 }
   0xa   :  { %v489_v38 = vrot.slane %v21_v27, %v121_v31  ;;  %v491_v39 = vrot.slane %v22_v30, %v121_v31  ;;  %v495_v46 = vrot.slane %v21_v27, %v161_v37  ;;  %v497_v47 = vrot.slane %v22_v30, %v161_v37  ;;  %p394_p3 = por %p393_p2, %p392_p1 }
   0xb   :  { %373 = vset.pattern.permute.xlu1 %v411_v5  ;;  %34 = vperm.xlu0 %370, %v24_v4   ;;  %v503_v59 = vrot.slane %v21_v27, %v201_v48  ;;  %v505_v60 = vrot.slane %v22_v30, %v201_v48 }
   0xc   :  { %116 = vperm.xlu1 %373, %v26_v0   ;;  %p395_p4 = pnand %p394_p3, %p388_p0 }
   0xf   :  { %376 = vset.pattern.permute.xlu0 %v412_v6 }
  0x10   :  { %374 = vset.pattern.permute.xlu1 %v409_v2  ;;  %156 = vperm.xlu0 %376, %v26_v0  }
  0x11   :  { %68 = vperm.xlu1 %374, %v24_v4  }
  0x14   :  { %379 = vset.pattern.permute.xlu0 %v411_v5 }
  0x15   :  { %375 = vset.pattern.permute.xlu1 %v411_v5  ;;  %108 = vperm.xlu0 %379, %v24_v4  }
  0x16   :  { %112 = vperm.xlu1 %375, %v25_v1  }
  0x19   :  { %104 = vperm.xlu0 %379, %v23_v7  }
  0x1a   :  { %377 = vset.pattern.permute.xlu1 %v410_v3 }
  0x1b   :  { %29 = vperm.xlu1 %377, %v23_v7  }
  0x1d   :  { %383 = vset.pattern.permute.xlu0 %v413_v8 }
  0x1e   :  { %192 = vperm.xlu0 %383, %v25_v1  }
  0x1f   :  { %378 = vset.pattern.permute.xlu1 %v409_v2 }
  0x20   :  { %64 = vperm.xlu1 %378, %v23_v7  }
  0x22   :  { %385 = vset.pattern.permute.xlu0 %v410_v3 }
  0x23   :  { %244 = vperm.xlu0 %385, %v226_v9  }
  0x24   :  { %380 = vset.pattern.permute.xlu1 %v412_v6 }
  0x25   :  { %152 = vperm.xlu1 %380, %v25_v1  }
  0x27   :  { %234 = vperm.xlu0 %385, %v224_v10  }
  0x29   :  { %381 = vset.pattern.permute.xlu1 %v413_v8 }
  0x2a   :  { %196 = vperm.xlu1 %381, %v26_v0  }
  0x2b   :  { %267 = vperm.xlu0 %385, %v264_v11  }
  0x2e   :  { %382 = vset.pattern.permute.xlu1 %v412_v6 }
  0x2f   :  { %148 = vperm.xlu1 %382, %v24_v4  }
  0x33   :  { %144 = vperm.xlu1 %382, %v23_v7  }
  0x37   :  { %384 = vset.pattern.permute.xlu1 %v413_v8 }
  0x38   :  { %188 = vperm.xlu1 %384, %v24_v4  }
  0x3c   :  { %184 = vperm.xlu1 %384, %v23_v7  }
  0x40   :  { %386 = vset.pattern.permute.xlu1 %v410_v3 }
  0x41   :  { %239 = vperm.xlu1 %386, %v225_v12  }
  0x45   :  { %229 = vperm.xlu1 %386, %v223_v13  }
  0x7d   :  { %v473_v15 = vpop.permute.xlu1 %39  ;;  %v77_v16 = vpop.permute.xlu0 %76 }
  0x7e   :  { %v93_v41 = vmul.f32 %v82_v35, %v77_v16  ;;  %v94_v42 = vmul.f32 %v86_v36, %v77_v16  ;;  %v59_v21 = vmul.f32 %v485_v32, %v473_v15 }
  0x82   :  { %v73_v17 = vpop.permute.xlu1 %72  ;;  %v45_v18 = vpop.permute.xlu0 %44 }
  0x83   :  { %v61_v43 = vmul.f32 %v485_v32, %v45_v18  ;;  %v62_v44 = vmul.f32 %v487_v34, %v45_v18  ;;  %v91_v12 = vmul.f32 %v82_v35, %v73_v17  ;;  %v92_v16 = vmul.f32 %v86_v36, %v73_v17 }
  0x85   :  { %v101_v49 = vadd.f32 %v93_v41, %v61_v43  ;;  %v102_v50 = vadd.f32 %v94_v42, %v62_v44 }
  0x86   :  { %v35_v22 = vpop.permute.xlu0 %34 }
  0x87   :  { %v117_v19 = vpop.permute.xlu1 %116  ;;  %v57_v8 = vmul.f32 %v485_v32, %v35_v22  ;;  %v58_v13 = vmul.f32 %v487_v34, %v35_v22  ;;  %v99_v22 = vadd.f32 %v91_v12, %v59_v21  ;;  %v263_v21 = vld [vmem:[%s548_s3] sm:$0xff] }
  0x88   :  { %v133_v51 = vmul.f32 %v489_v38, %v117_v19  ;;  %v134_v52 = vmul.f32 %v491_v39, %v117_v19 }
  0x8a   :  { %v141_v57 = vadd.f32 %v133_v51, %v101_v49  ;;  %v142_v58 = vadd.f32 %v134_v52, %v102_v50 }
  0x8b   :  { %v157_v25 = vpop.permute.xlu0 %156 }
  0x8c   :  { %v69_v20 = vpop.permute.xlu1 %68  ;;  %v173_v54 = vmul.f32 %v495_v46, %v157_v25  ;;  %v174_v55 = vmul.f32 %v497_v47, %v157_v25  ;;  %v60_v25 = vmul.f32 %v487_v34, %v473_v15 }
  0x8d   :  { %v89_v9 = vmul.f32 %v82_v35, %v69_v20  ;;  %v90_v14 = vmul.f32 %v86_v36, %v69_v20 }
  0x8e   :  { %v181_v62 = vadd.f32 %v173_v54, %v141_v57  ;;  %v182_v63 = vadd.f32 %v174_v55, %v142_v58  ;;  %v100_v28 = vadd.f32 %v92_v16, %v60_v25 }
  0x8f   :  { %v97_v26 = vadd.f32 %v89_v9, %v57_v8  ;;  %v98_v20 = vadd.f32 %v90_v14, %v58_v13 }
  0x90   :  { %v109_v33 = vpop.permute.xlu0 %108 }
  0x91   :  { %v475_v24 = vpop.permute.xlu1 %112  ;;  %v129_v18 = vmul.f32 %v489_v38, %v109_v33  ;;  %v130_v23 = vmul.f32 %v491_v39, %v109_v33 }
  0x92   :  { %v131_v27 = vmul.f32 %v489_v38, %v475_v24  ;;  %v132_v17 = vmul.f32 %v491_v39, %v475_v24 }
  0x93   :  { %v137_v30 = vadd.f32 %v129_v18, %v97_v26  ;;  %v138_v41 = vadd.f32 %v130_v23, %v98_v20 }
  0x94   :  { %v105_v45 = vpop.permute.xlu0 %104  ;;  %v139_v44 = vadd.f32 %v131_v27, %v99_v22  ;;  %v140_v50 = vadd.f32 %v132_v17, %v100_v28 }
  0x96   :  { %v480_v29 = vpop.permute.xlu1 %29 }
  0x97   :  { %v55_v48 = vmul.f32 %v485_v32, %v480_v29  ;;  %v56_v49 = vmul.f32 %v487_v34, %v480_v29 }
  0x99   :  { %v193_v56 = vpop.permute.xlu0 %192 }
  0x9a   :  { %v212_v57 = vmul.f32 %v505_v60, %v193_v56 }
  0x9b   :  { %v65_v40 = vpop.permute.xlu1 %64 }
  0x9c   :  { %v87_v31 = vmul.f32 %v82_v35, %v65_v40  ;;  %v88_v37 = vmul.f32 %v86_v36, %v65_v40  ;;  %v127_v35 = vmul.f32 %v489_v38, %v105_v45  ;;  %v128_v36 = vmul.f32 %v491_v39, %v105_v45 }
  0x9e   :  { %v245_v2 = vpop.permute.xlu0 %244  ;;  %v95_v51 = vadd.f32 %v87_v31, %v55_v48  ;;  %v96_v52 = vadd.f32 %v88_v37, %v56_v49 }
  0xa0   :  { %v153_v53 = vpop.permute.xlu1 %152  ;;  %v135_v45 = vadd.f32 %v127_v35, %v95_v51 }
  0xa1   :  { %v171_v33 = vmul.f32 %v495_v46, %v153_v53  ;;  %v172_v42 = vmul.f32 %v497_v47, %v153_v53  ;;  %v211_v53 = vmul.f32 %v503_v59, %v193_v56 }
  0xa3   :  { %v179_v55 = vadd.f32 %v171_v33, %v139_v44  ;;  %v180_v32 = vadd.f32 %v172_v42, %v140_v50 }
  0xa5   :  { %v197_v61 = vpop.permute.xlu1 %196 }
  0xa6   :  { %v213_v0 = vmul.f32 %v503_v59, %v197_v61  ;;  %v214_v1 = vmul.f32 %v505_v60, %v197_v61 }
  0xa8   :  { %v221_v3 = vadd.f32 %v213_v0, %v181_v62  ;;  %v222_v4 = vadd.f32 %v214_v1, %v182_v63  ;;  %v136_v62 = vadd.f32 %v128_v36, %v96_v52  ;;  %v235_v63 = vpop.permute.xlu0 %234 }
  0xaa   :  { %v253_v5 = vadd.f32 %v245_v2, %v221_v3  ;;  %v149_v6 = vpop.permute.xlu1 %148  ;;  %v254_v7 = vadd.f32 %v245_v2, %v222_v4  ;;  %v219_v3 = vadd.f32 %v211_v53, %v179_v55  ;;  %v220_v4 = vadd.f32 %v212_v57, %v180_v32 }
  0xab   :  { %v170_v15 = vmul.f32 %v497_v47, %v149_v6  ;;  %v169_v24 = vmul.f32 %v495_v46, %v149_v6 }
  0xac   :  { %v262_v10 = vmax.f32 %v254_v7, 0.0  ;;  %v261_v11 = vmax.f32 %v253_v5, 0.0  ;;  %v268_v23 = vpop.permute.xlu0 %267 }
  0xad   :  { %v178_v29 = vadd.f32 %v170_v15, %v138_v41  ;;  %v177_v58 = vadd.f32 %v169_v24, %v137_v30 }
  0xae   :  { %v145_v19 = vpop.permute.xlu1 %144  ;;  %298 = vmatprep.subr.mxu0 %v262_v10 }
  0xaf   :  { %299 = vmatpush1.msra.mxu0 %v261_v11  ;;  %v167_v61 = vmul.f32 %v495_v46, %v145_v19  ;;  %v168_v38 = vmul.f32 %v497_v47, %v145_v19 }
  0xb1   :  { %v175_v5 = vadd.f32 %v167_v61, %v135_v45  ;;  %v176_v6 = vadd.f32 %v168_v38, %v136_v62 }
  0xb3   :  { %v189_v43 = vpop.permute.xlu1 %188 }
  0xb4   :  { %v210_v40 = vmul.f32 %v505_v60, %v189_v43  ;;  %v209_v54 = vmul.f32 %v503_v59, %v189_v43 }
  0xb6   :  { %v218_v39 = vadd.f32 %v210_v40, %v178_v29  ;;  %v217_v0 = vadd.f32 %v209_v54, %v177_v58 }
  0xb7   :  { %v185_v34 = vpop.permute.xlu1 %184 }
  0xb8   :  { %v207_v1 = vmul.f32 %v503_v59, %v185_v34  ;;  %v208_v2 = vmul.f32 %v505_v60, %v185_v34  ;;  %v250_v7 = vadd.f32 %v235_v63, %v218_v39  ;;  %v249_v46 = vadd.f32 %v235_v63, %v217_v0 }
  0xba   :  { %v215_v11 = vadd.f32 %v207_v1, %v175_v5  ;;  %v216_v12 = vadd.f32 %v208_v2, %v176_v6  ;;  %v258_v14 = vmax.f32 %v250_v7, 0.0  ;;  %v257_v59 = vmax.f32 %v249_v46, 0.0 }
  0xbc   :  { %v240_v56 = vpop.permute.xlu1 %239 }
  0xbd   :  { %v251_v8 = vadd.f32 %v240_v56, %v219_v3  ;;  %v252_v9 = vadd.f32 %v240_v56, %v220_v4 }
  0xbf   :  { %v259_v10 = vmax.f32 %v251_v8, 0.0  ;;  %v260_v47 = vmax.f32 %v252_v9, 0.0 }
  0xc0   :  { %v230_v13 = vpop.permute.xlu1 %229 }
  0xc1   :  { %v247_v16 = vadd.f32 %v230_v13, %v215_v11  ;;  %v248_v18 = vadd.f32 %v230_v13, %v216_v12  ;;  %300 = vmatprep.subr.mxu0 %v260_v47 }
  0xc2   :  { %301 = vmatpush1.msra.mxu0 %v259_v10 }
  0xc3   :  { %v255_v60 = vmax.f32 %v247_v16, 0.0  ;;  %v256_v19 = vmax.f32 %v248_v18, 0.0  ;;  %302 = vmatprep.subr.mxu0 %v258_v14 }
  0xc4   :  { %303 = vmatpush1.msra.mxu0 %v257_v59 }
  0xc5   :  { %304 = vmatprep.subr.mxu0 %v256_v19 }
  0xc6   :  { %305 = vmatpush1.msra.mxu0 %v255_v60 }
  0xc7   :  { %361 = vmatmul.mubr.msk.f32.vlgmr.msra.gmra.mxu0 %vm270_vm0, %v263_v21 }
 0x187   :  { %v340_v25 = vpop.f32.mrf.mxu0 }
 0x188   :  { %v341_v26 = vadd.f32 %v340_v25, %v268_v23 }
 0x189   :  { %v342_v27 = vpop.f32.mrf.mxu0 }
 0x18a   :  { %345 = vst [vmem:[#allocation2] sm:$0xff] %v341_v26  ;;  %v343_v22 = vadd.f32 %v342_v27, %v268_v23 }
 0x18c   :  { %346 = vst [vmem:[#allocation2 + $0x8] sm:$0xff] %v343_v22 }
 0x18d   :  { %398 = shalt.err (!%p395_p4)
}
 0x18e   :  { %356 = dma.vmem_to_hbm [thread:$0]  %s354_s14, 256, %s550_s5, [#allocation3]  }
 0x18f   :  { %407 = dma.done.wait [#allocation3], 256  }
 0x190   :  { %408 = vsyncadd [#allocation3], 4294967040 }
 0x191   :  { %360 = vsyncpa [#allocation3], 1 }

</bundles_post_ra>
